<compile_context>
chip_gen: v6e
topology: v6e:2x2x1
jax: 0.10.0
libtpu: 0.0.40
codegen_flags: <defaults>
</compile_context>

<pallas_src>
import jax
import jax.numpy as jnp
from jax.experimental import pallas as pl
from jax.experimental.pallas import tpu as pltpu


def _color_shift_kernel(w_ref, x_ref, t_ref, o1_ref, o2_ref):
    # w_ref: SMEM (3,) pre-normalized weights in channel order (r, g, b).
    wr = w_ref[0]
    wg = w_ref[1]
    wb = w_ref[2]
    hw = o1_ref.shape[-1]
    x = x_ref[...]                       # (Bn, 3*hw) f32, channel-major lanes
    t = t_ref[...]
    o1_ref[...] = wr * x[:, 0:hw] + wg * x[:, hw:2 * hw] + wb * x[:, 2 * hw:3 * hw]
    o2_ref[...] = wr * t[:, 0:hw] + wg * t[:, hw:2 * hw] + wb * t[:, 2 * hw:3 * hw]


def _pick_block_rows(n, hw, target_bytes=8 << 20):
    """Rows per grid step: ~target_bytes of HBM traffic, multiple of 8, divides n."""
    bytes_per_row = (3 * hw + 3 * hw + hw + hw) * 4      # 2 inputs + 2 outputs, f32
    bn = max(8, (target_bytes // bytes_per_row) // 8 * 8)
    if n <= bn or n % 8 != 0:
        return n                                          # small/odd batch: one block
    for cand in range(int(bn), 7, -8):                    # largest aligned divisor
        if n % cand == 0:
            return cand
    return n


def _color_shift_call(x2, t2, weights):
    n, chw = x2.shape
    hw = chw // 3
    bn = _pick_block_rows(n, hw)
    grid = (n // bn,)
    out_shape = (jax.ShapeDtypeStruct((n, hw), jnp.float32),
                 jax.ShapeDtypeStruct((n, hw), jnp.float32))
    return pl.pallas_call(
        _color_shift_kernel,
        out_shape=out_shape,
        grid=grid,
        in_specs=[
            pl.BlockSpec(memory_space=pltpu.MemorySpace.SMEM),   # weights (3,)
            pl.BlockSpec((bn, chw), lambda i: (i, 0)),           # input  rows
            pl.BlockSpec((bn, chw), lambda i: (i, 0)),           # target rows
        ],
        out_specs=(
            pl.BlockSpec((bn, hw), lambda i: (i, 0)),
            pl.BlockSpec((bn, hw), lambda i: (i, 0)),
        ),
        compiler_params=pltpu.CompilerParams(
            dimension_semantics=("parallel",),
            vmem_limit_bytes=32 * 1024 * 1024),
    )(weights, x2, t2)


def _sample_weights(key):
    # TODO(synk): PyTorch draws from torch's global RNG; here we use an
    # explicit PRNGKey (same distributions, different random stream).
    kb, kr, kg = jax.random.split(key, 3)
    b_w = jax.random.uniform(kb, (), jnp.float32, 0.014, 0.214)
    r_w = jax.random.uniform(kr, (), jnp.float32, 0.199, 0.399)
    g_w = jax.random.uniform(kg, (), jnp.float32, 0.487, 0.687)
    # Fold the (b + g + r) normalization into the weights (channel order r,g,b).
    return jnp.stack([r_w, g_w, b_w]) / (b_w + g_w + r_w)


@jax.jit
def color_shift(inp, target, key):
    """ColorShift.forward: returns (output1, output2), each (N, 1, H, W)."""
    n, c, h, w = inp.shape
    assert c == 3
    weights = _sample_weights(key)
    x2 = inp.reshape(n, c * h * w)        # free view for NCHW
    t2 = target.reshape(n, c * h * w)
    o1, o2 = _color_shift_call(x2, t2, weights)
    return o1.reshape(n, 1, h, w), o2.reshape(n, 1, h, w)


if __name__ == "__main__":
    key = jax.random.PRNGKey(0)
    k_in, k_tgt, k_w = jax.random.split(key, 3)

    N, C, H, W = 2, 3, 16, 16
    inp = jax.random.uniform(k_in, (N, C, H, W), jnp.float32)
    target = jax.random.uniform(k_tgt, (N, C, H, W), jnp.float32)

    out1, out2 = color_shift(inp, target, k_w)
    out1, out2 = jax.block_until_ready((out1, out2))

    assert out1.shape == (N, 1, H, W) and out2.shape == (N, 1, H, W)

    # Pure-JAX reference check (same sampled weights).
    w = _sample_weights(k_w)
    ref1 = w[0] * inp[:, 0:1] + w[1] * inp[:, 1:2] + w[2] * inp[:, 2:3]
    ref2 = w[0] * target[:, 0:1] + w[1] * target[:, 1:2] + w[2] * target[:, 2:3]
    assert jnp.allclose(out1, ref1, atol=1e-6), "output1 mismatch vs reference"
    assert jnp.allclose(out2, ref2, atol=1e-6), "output2 mismatch vs reference"
    assert bool(jnp.isfinite(out1).all()) and bool(jnp.isfinite(out2).all())

    print("KERNEL_OK")
</pallas_src>

<mosaic_0001>
module attributes {stable_mosaic.version = 11 : i64} {
  func.func @_color_shift_kernel(%arg0: i32, %arg1: memref<3xf32, #tpu.memory_space<smem>>, %arg2: memref<2x768xf32, #tpu.memory_space<vmem>>, %arg3: memref<2x768xf32, #tpu.memory_space<vmem>>, %arg4: memref<2x256xf32, #tpu.memory_space<vmem>>, %arg5: memref<2x256xf32, #tpu.memory_space<vmem>>) attributes {dimension_semantics = [#tpu.dimension_semantics<parallel>], iteration_bounds = array<i64: 1>, scalar_prefetch = 0 : i64, scratch_operands = 0 : i64, tpu.core_type = #tpu.core_type<tc>, window_params = [{transform_indices = @transform_0, window_bounds = array<i64: 3>}, {transform_indices = @transform_1, window_bounds = array<i64: 2, 768>}, {transform_indices = @transform_2, window_bounds = array<i64: 2, 768>}, {transform_indices = @transform_3, window_bounds = array<i64: 2, 256>}, {transform_indices = @transform_4, window_bounds = array<i64: 2, 256>}]} {
    %c0 = arith.constant 0 : index
    %0 = memref.load %arg1[%c0] : memref<3xf32, #tpu.memory_space<smem>>
    %c1 = arith.constant 1 : index
    %1 = memref.load %arg1[%c1] : memref<3xf32, #tpu.memory_space<smem>>
    %c2 = arith.constant 2 : index
    %2 = memref.load %arg1[%c2] : memref<3xf32, #tpu.memory_space<smem>>
    %c0_0 = arith.constant 0 : index
    %c0_1 = arith.constant 0 : index
    %3 = vector.load %arg2[%c0_0, %c0_1] : memref<2x768xf32, #tpu.memory_space<vmem>>, vector<2x768xf32>
    %c0_2 = arith.constant 0 : index
    %c0_3 = arith.constant 0 : index
    %4 = vector.load %arg3[%c0_2, %c0_3] : memref<2x768xf32, #tpu.memory_space<vmem>>, vector<2x768xf32>
    %5 = vector.extract_strided_slice %3 {offsets = [0, 0], sizes = [2, 256], strides = [1, 1]} : vector<2x768xf32> to vector<2x256xf32>
    %6 = vector.broadcast %0 : f32 to vector<2x256xf32>
    %7 = arith.mulf %6, %5 : vector<2x256xf32>
    %8 = vector.extract_strided_slice %3 {offsets = [0, 256], sizes = [2, 256], strides = [1, 1]} : vector<2x768xf32> to vector<2x256xf32>
    %9 = vector.broadcast %1 : f32 to vector<2x256xf32>
    %10 = arith.mulf %9, %8 : vector<2x256xf32>
    %11 = arith.addf %7, %10 : vector<2x256xf32>
    %12 = vector.extract_strided_slice %3 {offsets = [0, 512], sizes = [2, 256], strides = [1, 1]} : vector<2x768xf32> to vector<2x256xf32>
    %13 = vector.broadcast %2 : f32 to vector<2x256xf32>
    %14 = arith.mulf %13, %12 : vector<2x256xf32>
    %15 = arith.addf %11, %14 : vector<2x256xf32>
    %c0_4 = arith.constant 0 : index
    %c0_5 = arith.constant 0 : index
    %16 = vector.load %arg4[%c0_4, %c0_5] : memref<2x256xf32, #tpu.memory_space<vmem>>, vector<2x256xf32>
    tpu.vector_store %arg4[%c0_4, %c0_5], %15 {strides = array<i32>} : memref<2x256xf32, #tpu.memory_space<vmem>>, vector<2x256xf32>,
    %17 = vector.extract_strided_slice %4 {offsets = [0, 0], sizes = [2, 256], strides = [1, 1]} : vector<2x768xf32> to vector<2x256xf32>
    %18 = vector.broadcast %0 : f32 to vector<2x256xf32>
    %19 = arith.mulf %18, %17 : vector<2x256xf32>
    %20 = vector.extract_strided_slice %4 {offsets = [0, 256], sizes = [2, 256], strides = [1, 1]} : vector<2x768xf32> to vector<2x256xf32>
    %21 = vector.broadcast %1 : f32 to vector<2x256xf32>
    %22 = arith.mulf %21, %20 : vector<2x256xf32>
    %23 = arith.addf %19, %22 : vector<2x256xf32>
    %24 = vector.extract_strided_slice %4 {offsets = [0, 512], sizes = [2, 256], strides = [1, 1]} : vector<2x768xf32> to vector<2x256xf32>
    %25 = vector.broadcast %2 : f32 to vector<2x256xf32>
    %26 = arith.mulf %25, %24 : vector<2x256xf32>
    %27 = arith.addf %23, %26 : vector<2x256xf32>
    %c0_6 = arith.constant 0 : index
    %c0_7 = arith.constant 0 : index
    %28 = vector.load %arg5[%c0_6, %c0_7] : memref<2x256xf32, #tpu.memory_space<vmem>>, vector<2x256xf32>
    tpu.vector_store %arg5[%c0_6, %c0_7], %27 {strides = array<i32>} : memref<2x256xf32, #tpu.memory_space<vmem>>, vector<2x256xf32>,
    return
  }
  func.func @transform_0(%arg0: i32) -> i32 {
    %c0_i32 = arith.constant 0 : i32
    %c0_i32_0 = arith.constant 0 : i32
    return %c0_i32 : i32
  }
  func.func @transform_1(%arg0: i32) -> (i32, i32) {
    %c0_i32 = arith.constant 0 : i32
    %c0_i32_0 = arith.constant 0 : i32
    return %arg0, %c0_i32 : i32, i32
  }
  func.func @transform_2(%arg0: i32) -> (i32, i32) {
    %c0_i32 = arith.constant 0 : i32
    %c0_i32_0 = arith.constant 0 : i32
    return %arg0, %c0_i32 : i32, i32
  }
  func.func @transform_3(%arg0: i32) -> (i32, i32) {
    %c0_i32 = arith.constant 0 : i32
    %c0_i32_0 = arith.constant 0 : i32
    return %arg0, %c0_i32 : i32, i32
  }
  func.func @transform_4(%arg0: i32) -> (i32, i32) {
    %c0_i32 = arith.constant 0 : i32
    %c0_i32_0 = arith.constant 0 : i32
    return %arg0, %c0_i32 : i32, i32
  }
}

</mosaic_0001>

<bundles_post_ra>
// kernel: color_shift.1
= control target key start
LH: loop header
LB: loop body
LE: loop exit
PB: predicated region body
PF: predicated region fallthrough
CT: control target
= control target key end

     0   :  { %10 = vsyncpa [#allocation3], 0  ;;  %s130_s0 = inlined_call_operand.vmem [shape: f32[3], index: 0, kind: input, shape index: {}]   ;;  %s131_s1 = inlined_call_operand.vmem [shape: f32[2,768], index: 1, kind: input, shape index: {}]   ;;  %s132_s2 = inlined_call_operand.vmem [shape: f32[2,768], index: 2, kind: input, shape index: {}]   ;;  %s133_s3 = inlined_call_operand.vmem [shape: f32[2,256], index: 3, kind: output, shape index: {0}]   ;;  %s134_s4 = inlined_call_operand.vmem [shape: f32[2,256], index: 4, kind: output, shape index: {1}]  }
   0x1   :  { %s17_s17 = sshll.u32 %s130_s0, 4  ;;  %s18_s17 = int_to_ptr.vmem [resolvable:$true] %s17_s17 }
   0x2   :  { %s69_s18 = scalar_lea.vmem %s18_s17, 16  ;;  %p74_p1 = scmp.lt.s32.totalorder %s18_s17, %s18_s17 }
   0x3   :  { %p70_p0 = scmp.ne.s32.totalorder %s18_s17, %s69_s18  ;;  %p75_p2 = scmp.lt.s32.totalorder %s69_s18, %s69_s18 }
   0x5   :  { %p76_p3 = por %p75_p2, %p74_p1 }
   0x7   :  { %p77_p4 = pnand %p76_p3, %p70_p0 }
   0x9   :  { %80 = shalt.err (!%p77_p4)
}
   0xa   :  { %s83_s19 = smov [#allocation2]  }
   0xb   :  { %20 = dma.vmem_to_smem %s18_s17, 16, %s83_s19, [#allocation3]  }
   0xc   :  { %81 = dma.done.wait [#allocation3], 16  }
   0xd   :  { %82 = vsyncadd [#allocation3], 4294967280 }
   0xe   :  { %28 = sfence }
   0xf   :  { %s29_s20 = sld [smem:[#allocation2]]  ;;  %v32_v0 = vld [vmem:[%s131_s1] sm:$0xff]  ;;  %v33_v4 = vld [vmem:[%s131_s1 + $0x8] sm:$0xf] }
  0x10   :  { %s66_s21 = sld [smem:[#allocation2 + $0x1]]  ;;  %v34_v1 = vld [vmem:[%s132_s2] sm:$0xff]  ;;  %v40_v2 = vrot.slane %v32_v0, 4  ;;  %v35_v6 = vld [vmem:[%s132_s2 + $0x8] sm:$0xf] }
  0x11   :  { %s67_s25 = sld [smem:[#allocation2 + $0x2]]  ;;  %v50_v3 = vrot.slane %v34_v1, 4 }
  0x15   :  { %v36_v5 = vstv %s29_s20 }
  0x16   :  { %v37_v7 = vmul.f32 %v36_v5, %v32_v0  ;;  %v38_v8 = vstv %s66_s21  ;;  %v48_v9 = vmul.f32 %v36_v5, %v34_v1 }
  0x17   :  { %v42_v10 = vmul.f32 %v40_v2, %v38_v8  ;;  %v44_v11 = vstv %s67_s25  ;;  %v52_v12 = vmul.f32 %v50_v3, %v38_v8 }
  0x18   :  { %v45_v13 = vmul.f32 %v44_v11, %v33_v4  ;;  %v54_v14 = vmul.f32 %v44_v11, %v35_v6 }
  0x19   :  { %v43_v15 = vadd.f32 %v42_v10, %v37_v7  ;;  %v53_v16 = vadd.f32 %v52_v12, %v48_v9 }
  0x1b   :  { %v46_v17 = vadd.f32 %v45_v13, %v43_v15  ;;  %v55_v18 = vadd.f32 %v54_v14, %v53_v16 }
  0x1d   :  { %47 = vst [vmem:[%s133_s3] sm:$0xf] %v46_v17  ;;  %56 = vst [vmem:[%s134_s4] sm:$0xf] %v55_v18 }
  0x1e   :  { %65 = vsyncpa [#allocation3], 1 }

</bundles_post_ra>
